<compile_context>
chip_gen: v5e
topology: v5e:2x2
jax: 0.10.0
libtpu: 0.0.40
codegen_flags: <defaults>
</compile_context>

<pallas_src>
import jax
import jax.numpy as jnp
from jax.experimental import pallas as pl
from jax.experimental.pallas import tpu as pltpu


def _round_up(a: int, b: int) -> int:
    return (a + b - 1) // b * b


def _mlp_kernel(x_ref, w1_ref, b1_ref, w2_ref, b2_ref, o_ref):
    # x_ref : (2, TN)   input transposed so batch sits on the lane axis
    # w1_ref: (20, 2)   fc1.weight (torch (out, in) layout), VMEM-resident
    # b1_ref: (20, 1)   fc1.bias as a column
    # w2_ref: (20, 1)   predict.weight^T as a column
    # b2_ref: (1, 1)    predict.bias, SMEM scalar
    # o_ref : (1, TN)
    x0 = x_ref[0:1, :]                       # (1, TN)
    x1 = x_ref[1:2, :]                       # (1, TN)
    w1c0 = w1_ref[:, 0:1]                    # (20, 1)
    w1c1 = w1_ref[:, 1:2]                    # (20, 1)

    # Layer 1 on the VPU: broadcast-multiply-add, h[j, n] = w1[j,0]*x0 + w1[j,1]*x1 + b1[j]
    h = w1c0 * x0 + w1c1 * x1 + b1_ref[...]  # (20, TN)
    h = jnp.maximum(h, 0.0)                  # ReLU

    # Layer 2: 20-term weighted sum across sublanes (XLU reduce) + scalar bias from SMEM.
    y = jnp.sum(h * w2_ref[...], axis=0, keepdims=True)   # (1, TN)
    o_ref[...] = y + b2_ref[0, 0]


def _ref_forward(x2, fc1_w, fc1_b, pred_w, pred_b):
    """Plain-JAX reference / small-batch fast path (same math as the torch module)."""
    h = jnp.maximum(x2 @ fc1_w.T + fc1_b, 0.0)
    return h @ pred_w.T + pred_b


def net_class_linear_forward(x, fc1_w, fc1_b, pred_w, pred_b,
                             *, block_n: int = 2048, min_pallas_n: int = 128):
    """Forward pass of Net_class_linear.

    x: any shape with total element count divisible by 2 (torch x.view(-1, 2)).
    fc1_w: (20, 2), fc1_b: (20,), pred_w: (1, 20), pred_b: (1,)  -- torch layouts.
    Returns (N, 1) with N = x.size // 2.
    """
    x2 = jnp.reshape(x, (-1, 2)).astype(jnp.float32)
    n = x2.shape[0]

    fc1_w = fc1_w.astype(jnp.float32)
    fc1_b = fc1_b.astype(jnp.float32)
    pred_w = pred_w.astype(jnp.float32)
    pred_b = pred_b.astype(jnp.float32)

    # Tiny batches: kernel launch + DMA setup would be 100% overhead; let XLA fuse it.
    if n < min_pallas_n:
        return _ref_forward(x2, fc1_w, fc1_b, pred_w, pred_b)

    # Lane tile (multiple of 128); pad N up to a tile multiple so every store is full-width.
    tn = min(_round_up(block_n, 128), _round_up(n, 128))
    n_pad = _round_up(n, tn)
    grid = n_pad // tn

    # Transpose so N is the lane axis; zero-pad the tail lanes.
    x_t = jnp.pad(x2, ((0, n_pad - n), (0, 0))).T            # (2, n_pad)

    b1_col = jnp.reshape(fc1_b, (20, 1))                      # (20, 1)
    w2_col = jnp.reshape(pred_w, (1, 20)).T                   # (20, 1)
    b2_2d = jnp.reshape(pred_b, (1, 1))                       # (1, 1) -> SMEM scalar

    out_t = pl.pallas_call(
        _mlp_kernel,
        out_shape=jax.ShapeDtypeStruct((1, n_pad), jnp.float32),
        grid=(grid,),
        in_specs=[
            pl.BlockSpec((2, tn), lambda i: (0, i)),           # x tile (lane-dense)
            pl.BlockSpec((20, 2), lambda i: (0, 0)),           # fc1 weight, VMEM-resident
            pl.BlockSpec((20, 1), lambda i: (0, 0)),           # fc1 bias
            pl.BlockSpec((20, 1), lambda i: (0, 0)),           # predict weight (column)
            pl.BlockSpec(memory_space=pltpu.MemorySpace.SMEM), # predict bias scalar
        ],
        out_specs=pl.BlockSpec((1, tn), lambda i: (0, i)),
        compiler_params=pltpu.CompilerParams(
            dimension_semantics=("parallel",),                 # v7x: shard tiles over 2 TCs
            vmem_limit_bytes=32 * 1024 * 1024,                 # fits v5e/v6e/v7x scoped VMEM
        ),
    )(x_t, fc1_w, b1_col, w2_col, b2_2d)

    # Drop the padded lanes and present the torch-shaped (N, 1) result.
    return out_t[0, :n].reshape(n, 1)


def init_params(key):
    """Deterministic init matching torch.nn.Linear shapes (weight = (out, in))."""
    k1, k2, k3, k4 = jax.random.split(key, 4)
    # fc1: Linear(2, 20)
    bound1 = 1.0 / jnp.sqrt(2.0)
    fc1_w = jax.random.uniform(k1, (20, 2), jnp.float32, -bound1, bound1)
    fc1_b = jax.random.uniform(k2, (20,), jnp.float32, -bound1, bound1)
    # predict: Linear(20, 1)
    bound2 = 1.0 / jnp.sqrt(20.0)
    pred_w = jax.random.uniform(k3, (1, 20), jnp.float32, -bound2, bound2)
    pred_b = jax.random.uniform(k4, (1,), jnp.float32, -bound2, bound2)
    return fc1_w, fc1_b, pred_w, pred_b


if __name__ == "__main__":
    key = jax.random.PRNGKey(0)
    pkey, xkey = jax.random.split(key)
    fc1_w, fc1_b, pred_w, pred_b = init_params(pkey)

    # Input consistent with x.view(-1, 2): (500, 4) elements -> 1000 rows of 2 features.
    # block_n=256 -> padded N=1024, grid of 4 tiles (exercises the pipelined/parallel path).
    x = jax.random.normal(xkey, (500, 4), jnp.float32)

    y = net_class_linear_forward(x, fc1_w, fc1_b, pred_w, pred_b, block_n=256)
    y = jax.block_until_ready(y)

    x2 = jnp.reshape(x, (-1, 2))
    y_ref = _ref_forward(x2, fc1_w, fc1_b, pred_w, pred_b)
    assert y.shape == (1000, 1), y.shape
    assert jnp.allclose(y, y_ref, atol=1e-5, rtol=1e-5)

    # Tiny-batch fast path (plain JAX fallback below the Pallas threshold).
    x_small = jax.random.normal(jax.random.PRNGKey(1), (8, 2), jnp.float32)
    y_small = jax.block_until_ready(
        net_class_linear_forward(x_small, fc1_w, fc1_b, pred_w, pred_b))
    y_small_ref = _ref_forward(x_small.reshape(-1, 2), fc1_w, fc1_b, pred_w, pred_b)
    assert y_small.shape == (8, 1), y_small.shape
    assert jnp.allclose(y_small, y_small_ref, atol=1e-5, rtol=1e-5)

    print("KERNEL_OK")
</pallas_src>

<mosaic_0001>
module attributes {stable_mosaic.version = 11 : i64} {
  func.func @_mlp_kernel(%arg0: i32, %arg1: memref<2x256xf32, #tpu.memory_space<vmem>>, %arg2: memref<20x2xf32, #tpu.memory_space<vmem>>, %arg3: memref<20x1xf32, #tpu.memory_space<vmem>>, %arg4: memref<20x1xf32, #tpu.memory_space<vmem>>, %arg5: memref<1x1xf32, #tpu.memory_space<smem>>, %arg6: memref<1x256xf32, #tpu.memory_space<vmem>>) attributes {dimension_semantics = [#tpu.dimension_semantics<parallel>], iteration_bounds = array<i64: 4>, scalar_prefetch = 0 : i64, scratch_operands = 0 : i64, tpu.core_type = #tpu.core_type<tc>, window_params = [{transform_indices = @transform_0, window_bounds = array<i64: 2, 256>}, {pipeline_mode = #tpu.pipeline_mode<synchronous>, transform_indices = @transform_1, window_bounds = array<i64: 20, 2>}, {pipeline_mode = #tpu.pipeline_mode<synchronous>, transform_indices = @transform_2, window_bounds = array<i64: 20, 1>}, {pipeline_mode = #tpu.pipeline_mode<synchronous>, transform_indices = @transform_3, window_bounds = array<i64: 20, 1>}, {transform_indices = @transform_4, window_bounds = array<i64: 1, 1>}, {transform_indices = @transform_5, window_bounds = array<i64: 1, 256>}]} {
    %c0 = arith.constant 0 : index
    %c0_0 = arith.constant 0 : index
    %0 = vector.load %arg1[%c0, %c0_0] : memref<2x256xf32, #tpu.memory_space<vmem>>, vector<1x256xf32>
    %c1 = arith.constant 1 : index
    %c0_1 = arith.constant 0 : index
    %1 = vector.load %arg1[%c1, %c0_1] : memref<2x256xf32, #tpu.memory_space<vmem>>, vector<1x256xf32>
    %c0_2 = arith.constant 0 : index
    %c0_3 = arith.constant 0 : index
    %2 = vector.load %arg2[%c0_2, %c0_3] : memref<20x2xf32, #tpu.memory_space<vmem>>, vector<20x1xf32>
    %c0_4 = arith.constant 0 : index
    %c1_5 = arith.constant 1 : index
    %3 = vector.load %arg2[%c0_4, %c1_5] : memref<20x2xf32, #tpu.memory_space<vmem>>, vector<20x1xf32>
    %4 = vector.broadcast %2 : vector<20x1xf32> to vector<20x256xf32>
    %5 = vector.broadcast %0 : vector<1x256xf32> to vector<20x256xf32>
    %6 = arith.mulf %4, %5 : vector<20x256xf32>
    %7 = vector.broadcast %3 : vector<20x1xf32> to vector<20x256xf32>
    %8 = vector.broadcast %1 : vector<1x256xf32> to vector<20x256xf32>
    %9 = arith.mulf %7, %8 : vector<20x256xf32>
    %10 = arith.addf %6, %9 : vector<20x256xf32>
    %c0_6 = arith.constant 0 : index
    %c0_7 = arith.constant 0 : index
    %11 = vector.load %arg3[%c0_6, %c0_7] : memref<20x1xf32, #tpu.memory_space<vmem>>, vector<20x1xf32>
    %12 = vector.broadcast %11 : vector<20x1xf32> to vector<20x256xf32>
    %13 = arith.addf %10, %12 : vector<20x256xf32>
    %cst = arith.constant 0.000000e+00 : f32
    %14 = vector.broadcast %cst : f32 to vector<20x256xf32>
    %15 = arith.maximumf %13, %14 : vector<20x256xf32>
    %c0_8 = arith.constant 0 : index
    %c0_9 = arith.constant 0 : index
    %16 = vector.load %arg4[%c0_8, %c0_9] : memref<20x1xf32, #tpu.memory_space<vmem>>, vector<20x1xf32>
    %17 = vector.broadcast %16 : vector<20x1xf32> to vector<20x256xf32>
    %18 = arith.mulf %15, %17 : vector<20x256xf32>
    %cst_10 = arith.constant dense<0.000000e+00> : vector<256xf32>
    %19 = vector.multi_reduction <add>, %18, %cst_10 [0] : vector<20x256xf32> to vector<256xf32>
    %20 = vector.shape_cast %19 : vector<256xf32> to vector<1x256xf32>
    %c0_11 = arith.constant 0 : index
    %c0_12 = arith.constant 0 : index
    %21 = memref.load %arg5[%c0_11, %c0_12] : memref<1x1xf32, #tpu.memory_space<smem>>
    %22 = vector.broadcast %21 : f32 to vector<1x256xf32>
    %23 = arith.addf %20, %22 : vector<1x256xf32>
    %c0_13 = arith.constant 0 : index
    %c0_14 = arith.constant 0 : index
    %24 = vector.load %arg6[%c0_13, %c0_14] : memref<1x256xf32, #tpu.memory_space<vmem>>, vector<1x256xf32>
    tpu.vector_store %arg6[%c0_13, %c0_14], %23 {strides = array<i32>} : memref<1x256xf32, #tpu.memory_space<vmem>>, vector<1x256xf32>,
    return
  }
  func.func @transform_0(%arg0: i32) -> (i32, i32) {
    %c0_i32 = arith.constant 0 : i32
    %c0_i32_0 = arith.constant 0 : i32
    return %c0_i32, %arg0 : i32, i32
  }
  func.func @transform_1(%arg0: i32) -> (i32, i32) {
    %c0_i32 = arith.constant 0 : i32
    %c0_i32_0 = arith.constant 0 : i32
    %c0_i32_1 = arith.constant 0 : i32
    return %c0_i32, %c0_i32_0 : i32, i32
  }
  func.func @transform_2(%arg0: i32) -> (i32, i32) {
    %c0_i32 = arith.constant 0 : i32
    %c0_i32_0 = arith.constant 0 : i32
    %c0_i32_1 = arith.constant 0 : i32
    return %c0_i32, %c0_i32_0 : i32, i32
  }
  func.func @transform_3(%arg0: i32) -> (i32, i32) {
    %c0_i32 = arith.constant 0 : i32
    %c0_i32_0 = arith.constant 0 : i32
    %c0_i32_1 = arith.constant 0 : i32
    return %c0_i32, %c0_i32_0 : i32, i32
  }
  func.func @transform_4(%arg0: i32) -> (i32, i32) {
    %c0_i32 = arith.constant 0 : i32
    %c0_i32_0 = arith.constant 0 : i32
    %c0_i32_1 = arith.constant 0 : i32
    return %c0_i32, %c0_i32_0 : i32, i32
  }
  func.func @transform_5(%arg0: i32) -> (i32, i32) {
    %c0_i32 = arith.constant 0 : i32
    %c0_i32_0 = arith.constant 0 : i32
    return %c0_i32, %arg0 : i32, i32
  }
}

</mosaic_0001>

<bundles_post_ra>
// kernel: tpu_custom_call.1
= control target key start
LH: loop header
LB: loop body
LE: loop exit
PB: predicated region body
PF: predicated region fallthrough
CT: control target
= control target key end

     0   :  { %s724_s0 = inlined_call_operand.vmem [shape: f32[2,1024], index: 0, kind: input, shape index: {}]   ;;  %s725_s1 = inlined_call_operand.vmem [shape: f32[20,2], index: 1, kind: input, shape index: {}]   ;;  %s726_s2 = inlined_call_operand.vmem [shape: f32[20,1], index: 2, kind: input, shape index: {}]   ;;  %s727_s3 = inlined_call_operand.vmem [shape: f32[20,1], index: 3, kind: input, shape index: {}]   ;;  %s728_s4 = inlined_call_operand.<no memory space> [shape: f32[1,1], index: 4, kind: input, shape index: {}]   ;;  %s729_s5 = inlined_call_operand.hbm [shape: f32[1,1024], index: 5, kind: output, shape index: {}]  }
   0x1   :  { %10 = sst [smem:[#allocation2]] %s728_s4 }
   0x2   :  { %11 = vsyncpa [#allocation4], 0 }
   0x3   :  { %13 = vsyncpa [#allocation4 + $0x1], 0  ;;  %s609_s20 = smov 0   ;;  %s611_s21 = smov 0  }
   0x4   :  { %s613_s22 = smov 0   ;;  %s615_s23 = smov 0  }
   0x5 LB: > { %s450_s4 = sadd.s32 4294967295, %s572_s23   ;;  %s451_s24 = sadd.s32 4294967294, %s572_s23   ;;  %s572_s23 = sphi %s615_s23, %s735_s23   ;;  %s568_s22 = sphi %s613_s22, %s734_s22   ;;  %s564_s21 = sphi %s611_s21, %s733_s21   ;;  %s560_s20 = sphi %s609_s20, %s732_s20  }
   0x6   : > { %s632_s25 = sadd.s32 1, %s572_s23   ;;  %s136_s26 = sadd.s32 1, %s568_s22 }
   0x7   : > { %s133_s27 = ssub.s32 %s572_s23, %s632_s25  ;;  %p146_p0 = scmp.ne.s32.totalorder %s568_s22, %s564_s21 }
   0x8   : > { %p134_p1 = scmp.eq.s32.totalorder %s133_s27, 0  ;;  %p147_p2 = scmp.eq.s32.totalorder %s450_s4, 3 }
   0x9   : > { %p152_p3 = scmp.ne.s32.totalorder %s564_s21, %s560_s20  ;;  %p153_p4 = scmp.eq.s32.totalorder %s451_s24, 3 }
   0xa   : > { %s644_s28 = scalar_select %p134_p1, %s568_s22, %s136_s26  }
   0xb   : > { %p646_p5 = por %p147_p2, %p146_p0  ;;  %p650_p6 = por %p153_p4, %p152_p3 }
   0xc   : > { %p454_p7 = scmp.ge.s32.totalorder %s572_s23, 1  ;;  %p192_p8 = scmp.lt.s32.totalorder %s572_s23, 5 }
   0xe   : > { %p193_p9 = pnand %p454_p7, %p192_p8 }
   0xf   : > { %s685_s7 = sshll.u32 (!%p193_p9), %s450_s4, 1  ;;  %s361_s4 = sld [smem:[#allocation2]] (!%p193_p9) }
  0x10   : > { %196 = sbr.rel (%p193_p9) target bundleno = 189 (0xbd), region = 40  ;;  %p221_p10 = scmp.lt.s32.totalorder (!%p193_p9), %s685_s7, 7 }
  0x11   : > { %s217_s13 = sand.u32 (!%p193_p9), 1, %s564_s21   ;;  %s387_s17 = scalar_lea.hbm (!%p193_p9), %s729_s5, %s685_s7 }
  0x12   : > { %s455_s14 = sshll.u32 (!%p193_p9), %s217_s13, 1  ;;  %s391_s24 = sshll.u32 (!%p193_p9), %s387_s17, 4  ;;  %s392_s24 = int_to_ptr.hbm [resolvable:$true] %s391_s24 }
  0x13   : > { %s219_s18 = scalar_lea.vmem (!%p193_p9), [#allocation3], %s455_s14  ;;  %s377_s26 = scalar_lea.sflag (!%p193_p9), [#allocation4], %s217_s13 }
  0x14   : > { %s389_s19 = sshll.u32 (!%p193_p9), %s219_s18, 4  ;;  %s524_s27 = sshra.s32 (!%p193_p9), %s392_s24, 4  ;;  %s390_s19 = int_to_ptr.vmem [resolvable:$true] %s389_s19  ;;  %s525_s27 = int_to_ptr.hbm [resolvable:$true] %s524_s27 }
  0x15   : > { %v230_v0 = vld [vmem:[%s725_s1] sm:$0xff]  ;;  %v574_v1 = vmov 1   ;;  %v575_v2 = vmov 0   ;;  %v232_v3 = vld [vmem:[%s725_s1 + $0x10] sm:$0xf]  ;;  %v231_v4 = vld [vmem:[%s725_s1 + $0x8] sm:$0xff]  ;;  %p531_p0 = scmp.lt.s32.totalorder %s525_s27, %s729_s5 }
  0x16   : > { %505 = vset.pattern.permute.xlu1 %v574_v1  ;;  %504 = vset.pattern.permute.xlu0 %v575_v2  ;;  %v288_v5 = vld [vmem:[%s726_s2] sm:$0xff]  ;;  %v289_v6 = vld [vmem:[%s726_s2 + $0x8] sm:$0xff]  ;;  %v290_v7 = vld [vmem:[%s726_s2 + $0x10] sm:$0xf]  ;;  %s222_s8 = scalar_select %p221_p10, %s685_s7, 7  ;;  %vm343_vm0 = vcmask 1043456  }
  0x17   : > { %260 = vperm.xlu1 %505, %v230_v0   ;;  %235 = vperm.xlu0 %504, %v230_v0   ;;  %v318_v8 = vld [vmem:[%s727_s3] sm:$0xff]  ;;  %v319_v9 = vld [vmem:[%s727_s3 + $0x8] sm:$0xff]  ;;  %v320_v10 = vld [vmem:[%s727_s3 + $0x10] sm:$0xf]  ;;  %vm368_vm1 = vcmask 1040384   ;;  %s526_s6 = scalar_lea.hbm %s525_s27, 2 }
  0x18   : > { %506 = vset.pattern.permute.xlu2 %v575_v2  ;;  %s457_s9 = sshll.u32 %s222_s8, 1  ;;  %p527_p11 = scmp.ne.s32.totalorder %s525_s27, %s526_s6 }
  0x19   : > { %245 = vperm.xlu2 %506, %v232_v3   ;;  %s224_s12 = scalar_lea.vmem %s724_s0, %s457_s9  ;;  %s530_s9 = scalar_lea.hbm %s729_s5, 8 }
  0x1a   : > { %v227_v14 = vld [vmem:[%s224_s12] ss:$2 sm:$0x3]  ;;  %v458_v15 = vld [vmem:[%s224_s12 + $0x1] ss:$2 sm:$0x3]  ;;  %p528_p12 = pnand %p527_p11, %p646_p5  ;;  %p532_p1 = scmp.lt.s32.totalorder %s530_s9, %s526_s6 }
  0x1b   : > { %v249_v17 = vperm.slane %v227_v14, 0  ;;  %v250_v18 = vperm.slane %v227_v14, 1  ;;  %v272_v19 = vperm.slane %v458_v15, 0  ;;  %v273_v20 = vperm.slane %v458_v15, 1 }
  0x1c   : > { %p529_p13 = pneg %p528_p12  ;;  %p533_p2 = por %p532_p1, %p531_p0 }
  0x1e   : > { %p534_p3 = pnand %p533_p2, %p529_p13 }
  0x1f   : > { %264 = vperm.xlu1 %505, %v231_v4   ;;  %240 = vperm.xlu0 %504, %v231_v4  }
  0x21   : > { %507 = vset.pattern.permute.xlu2 %v574_v1 }
  0x22   : > { %268 = vperm.xlu2 %507, %v232_v3  }
  0x27   : > { %508 = vset.pattern.permute.xlu1 %v575_v2  ;;  %293 = vperm.xlu0 %504, %v288_v5  }
  0x28   : > { %298 = vperm.xlu1 %508, %v289_v6  }
  0x2a   : > { %509 = vset.pattern.permute.xlu2 %v575_v2 }
  0x2b   : > { %303 = vperm.xlu2 %509, %v290_v7  }
  0x2f   : > { %323 = vperm.xlu0 %504, %v318_v8  }
  0x30   : > { %328 = vperm.xlu1 %508, %v319_v9  }
  0x33   : > { %333 = vperm.xlu2 %509, %v320_v10  }
  0x73   : > { %v246_v11 = vpop.permute.xlu2 %245 }
  0x74   : > { %v257_v21 = vmul.f32 %v249_v17, %v246_v11  ;;  %v258_v22 = vmul.f32 %v250_v18, %v246_v11 }
  0x7c   : > { %v269_v16 = vpop.permute.xlu2 %268 }
  0x7d   : > { %v280_v23 = vmul.f32 %v272_v19, %v269_v16  ;;  %v281_v24 = vmul.f32 %v273_v20, %v269_v16 }
  0x7f   : > { %v286_v28 = vadd.f32 %v280_v23, %v257_v21  ;;  %v287_v29 = vadd.f32 %v281_v24, %v258_v22 }
  0x85   : > { %v304_v27 = vpop.permute.xlu2 %303 }
  0x86   : > { %v310_v39 = vadd.f32 %v304_v27, %v286_v28  ;;  %v311_v40 = vadd.f32 %v304_v27, %v287_v29 }
  0x88   : > { %v316_v50 = vmax.f32 %v310_v39, 0.0  ;;  %v317_v51 = vmax.f32 %v311_v40, 0.0 }
  0x89   : > { %v261_v12 = vpop.permute.xlu1 %260  ;;  %v236_v13 = vpop.permute.xlu0 %235 }
  0x8a   : > { %v276_v30 = vmul.f32 %v272_v19, %v261_v12  ;;  %v277_v31 = vmul.f32 %v273_v20, %v261_v12  ;;  %v253_v32 = vmul.f32 %v249_v17, %v236_v13  ;;  %v254_v33 = vmul.f32 %v250_v18, %v236_v13 }
  0x8c   : > { %v282_v41 = vadd.f32 %v276_v30, %v253_v32  ;;  %v283_v42 = vadd.f32 %v277_v31, %v254_v33 }
  0x8d   : > { %v334_v52 = vpop.permute.xlu2 %333 }
  0x8e   : > { %v340_v58 = vmul.f32 %v334_v52, %v316_v50  ;;  %v341_v59 = vmul.f32 %v334_v52, %v317_v51 }
  0x90   : > { %v344_v3 = vsel %vm343_vm0, %v340_v58, 0.0  ;;  %v353_v4 = vsel %vm343_vm0, %v341_v59, 0.0 }
  0x91   : > { %v265_v25 = vpop.permute.xlu1 %264  ;;  %v241_v26 = vpop.permute.xlu0 %240 }
  0x92   : > { %v278_v34 = vmul.f32 %v272_v19, %v265_v25  ;;  %v279_v35 = vmul.f32 %v273_v20, %v265_v25  ;;  %v255_v36 = vmul.f32 %v249_v17, %v241_v26  ;;  %v256_v37 = vmul.f32 %v250_v18, %v241_v26 }
  0x93   : > { %v362_v17 = vstv %s361_s4  ;;  %v371_v20 = vlaneseq }
  0x94   : > { %v284_v44 = vadd.f32 %v278_v34, %v255_v36  ;;  %v285_v45 = vadd.f32 %v279_v35, %v256_v37 }
  0x95   : > { %vm373_vm2 = vcmp.lt.s32.totalorder %v371_v20, 256 }
  0x99   : > { %v294_v38 = vpop.permute.xlu0 %293 }
  0x9a   : > { %v299_v43 = vpop.permute.xlu1 %298  ;;  %v306_v46 = vadd.f32 %v294_v38, %v282_v41  ;;  %v307_v47 = vadd.f32 %v294_v38, %v283_v42 }
  0x9b   : > { %v308_v48 = vadd.f32 %v299_v43, %v284_v44  ;;  %v309_v49 = vadd.f32 %v299_v43, %v285_v45 }
  0x9c   : > { %v312_v53 = vmax.f32 %v306_v46, 0.0  ;;  %v313_v54 = vmax.f32 %v307_v47, 0.0 }
  0x9d   : > { %v314_v55 = vmax.f32 %v308_v48, 0.0  ;;  %v315_v56 = vmax.f32 %v309_v49, 0.0 }
  0xa1   : > { %v324_v57 = vpop.permute.xlu0 %323 }
  0xa2   : > { %v336_v60 = vmul.f32 %v324_v57, %v312_v53  ;;  %v337_v61 = vmul.f32 %v324_v57, %v313_v54  ;;  %v329_v62 = vpop.permute.xlu1 %328 }
  0xa3   : > { %v338_v63 = vmul.f32 %v329_v62, %v314_v55  ;;  %v339_v0 = vmul.f32 %v329_v62, %v315_v56 }
  0xa5   : > { %v342_v1 = vadd.f32 %v338_v63, %v336_v60  ;;  %v352_v2 = vadd.f32 %v339_v0, %v337_v61 }
  0xa7   : > { %v345_v5 = vadd.f32 %v344_v3, %v342_v1  ;;  %v354_v6 = vadd.f32 %v353_v4, %v352_v2 }
  0xa9   : > { %v346_v7 = vrot.slane %v345_v5, 4  ;;  %v355_v8 = vrot.slane %v354_v6, 4 }
  0xab   : > { %v347_v9 = vadd.f32 %v346_v7, %v345_v5  ;;  %v356_v10 = vadd.f32 %v355_v8, %v354_v6 }
  0xad   : > { %v348_v11 = vrot.slane %v347_v9, 2  ;;  %v357_v12 = vrot.slane %v356_v10, 2 }
  0xaf   : > { %v349_v13 = vadd.f32 %v348_v11, %v347_v9  ;;  %v358_v14 = vadd.f32 %v357_v12, %v356_v10 }
  0xb1   : > { %v350_v15 = vrot.slane %v349_v13, 1  ;;  %v359_v16 = vrot.slane %v358_v14, 1 }
  0xb3   : > { %v351_v18 = vadd.f32 %v350_v15, %v349_v13  ;;  %v360_v19 = vadd.f32 %v359_v16, %v358_v14 }
  0xb5   : > { %v364_v21 = vadd.f32 %v362_v17, %v360_v19  ;;  %v363_v22 = vadd.f32 %v362_v17, %v351_v18 }
  0xb7   : > { %v367_v23 = vrot.slane %v364_v21, 7 }
  0xb9   : > { %v369_v24 = vsel %vm368_vm1, %v363_v22, %v367_v23 }
  0xba   : > { %375 = vst.msk [vmem:[%s219_s18] sm:$0x3] %vm373_vm2, %v369_v24 }
  0xbb   : > { %537 = shalt.err (!%p534_p3)
}
  0xbc   : > { %463 = dma.vmem_to_hbm [thread:$0]  (%p646_p5), %s390_s19, 32, %s392_s24, %s377_s26  }
  0xbd PF: > { %p469_p4 = scmp.ge.s32.totalorder %s572_s23, 2  ;;  %s403_s12 = sand.u32 1, %s560_s20  }
  0xbe   : > { %s404_s4 = scalar_lea.sflag [#allocation4], %s403_s12 }
  0xbf   : > { %p466_p7 = pnand %p469_p4, %p650_p6 }
  0xc1   : > { %p467_p8 = pneg %p466_p7 }
  0xc3   : > { %555 = dma.done.wait (%p467_p8), %s404_s4, 32  }
  0xc4   : > { %557 = vsyncadd (%p467_p8), %s404_s4, 4294967264  ;;  %p16_p9 = scmp.ge.s32.totalorder %s632_s25, 6   ;;  %s732_s20 = smov %s564_s21 }
  0xc5   : > { %s733_s21 = smov %s568_s22  ;;  %s734_s22 = smov %s644_s28 }
  0xc6   : > { %s735_s23 = smov %s632_s25  ;;  %18 = sbr.rel (!%p16_p9) target bundleno = 5 (0x5), region = 76 }
  0xcb   :  { %410 = vsyncpa [#allocation4], 1 }
  0xcc   :  { %412 = vsyncpa [#allocation4 + $0x1], 1 }

</bundles_post_ra>
